<compile_context>
chip_gen: v7x
topology: tpu7x:2x2x1
jax: 0.10.0
libtpu: 0.0.40
codegen_flags: <defaults>
</compile_context>

<pallas_src>
import jax
import jax.numpy as jnp
from jax.experimental import pallas as pl
from jax.experimental.pallas import tpu as pltpu

LANE = 128


def _round_up(n, m):
    return -(-n // m) * m


def cpdnet_kernel(x_ref, w1_ref, b1_ref, w2_ref, b2_ref, w3_ref, b3_ref, o_ref):
    dot_dtype = w1_ref.dtype  # matmul input dtype (bf16 default / f32); accum is f32.

    # Layer 1: (bt, obs) @ (obs, hid_p) -> +bias -> ReLU   (f32 accumulate)
    h1 = jnp.dot(x_ref[...], w1_ref[...], preferred_element_type=jnp.float32)
    h1 = jnp.maximum(h1 + b1_ref[...], 0.0)

    # Layer 2: (bt, hid_p) @ (hid_p, hid_p) -> +bias -> ReLU
    h2 = jnp.dot(h1.astype(dot_dtype), w2_ref[...],
                 preferred_element_type=jnp.float32)
    h2 = jnp.maximum(h2 + b2_ref[...], 0.0)

    # Output layer: (bt, hid_p) @ (hid_p, act_p) -> +bias.  Padded action
    # columns carry bias -1e30 -> exp() == 0 -> softmax ignores them.
    logits = jnp.dot(h2.astype(dot_dtype), w3_ref[...],
                     preferred_element_type=jnp.float32) + b3_ref[...]

    # Numerically-stable softmax over the lane-dense (128-wide) padded last
    # dim; exact normalization so rows sum to 1 in f32.
    m = jnp.max(logits, axis=-1, keepdims=True)
    e = jnp.exp(logits - m)
    probs = e / jnp.sum(e, axis=-1, keepdims=True)

    # Store only the real action columns (16x smaller writeback than 128-wide).
    o_ref[...] = probs[:, : o_ref.shape[-1]].astype(o_ref.dtype)


def _pick_batch_tiling(B, max_batch_tile=1024, split_threshold=512):
    """Choose (bt, Bp): one step for small B (no per-step overhead on the
    single-TC v5e/v6e), two steps for medium B (keeps both v7x TensorCores
    busy), capped tiles with grid >= 2 for large B."""
    if B > max_batch_tile:
        bt = max_batch_tile
        Bp = _round_up(B, bt)
    elif B >= split_threshold:
        bt = _round_up(-(-B // 2), 16)
        Bp = 2 * bt
    else:
        bt = _round_up(B, 16)
        Bp = bt
    return bt, Bp


def make_cpdnet_forward(params, *, matmul_dtype=jnp.bfloat16,
                        max_batch_tile=1024):
    """Pads/casts the parameters ONCE and returns a jitted forward(x)->probs."""
    obs_dim, hidden = params["w1"].shape
    act_dim = params["w3"].shape[1]
    hid_p = _round_up(hidden, LANE)
    act_p = _round_up(act_dim, LANE)

    f32 = jnp.float32
    # Zero-padded weights (padded K rows / N cols contribute nothing); matmul
    # inputs in matmul_dtype (bf16 by default), biases stay f32.
    w1 = (jnp.zeros((obs_dim, hid_p), f32)
          .at[:, :hidden].set(params["w1"]).astype(matmul_dtype))
    w2 = (jnp.zeros((hid_p, hid_p), f32)
          .at[:hidden, :hidden].set(params["w2"]).astype(matmul_dtype))
    w3 = (jnp.zeros((hid_p, act_p), f32)
          .at[:hidden, :act_dim].set(params["w3"]).astype(matmul_dtype))
    b1 = jnp.zeros((1, hid_p), f32).at[:, :hidden].set(params["b1"].reshape(1, -1))
    b2 = jnp.zeros((1, hid_p), f32).at[:, :hidden].set(params["b2"].reshape(1, -1))
    # Padded logit columns get a huge negative bias so softmax ignores them.
    b3 = jnp.full((1, act_p), -1e30, f32).at[:, :act_dim].set(
        params["b3"].reshape(1, -1))

    def forward(x):
        B = x.shape[0]
        bt, Bp = _pick_batch_tiling(B, max_batch_tile)
        grid = (Bp // bt,)

        # Only pad batch rows.  obs_dim stays unpadded: a block whose last dim
        # equals the full array dim is legal and keeps the x DMA ~4x smaller.
        x_p = x if Bp == B else jnp.zeros((Bp, obs_dim), x.dtype).at[:B].set(x)
        x_p = x_p.astype(matmul_dtype)

        const = lambda i: (0, 0)  # weights/biases stay VMEM-resident across steps

        out = pl.pallas_call(
            cpdnet_kernel,
            out_shape=jax.ShapeDtypeStruct((Bp, act_dim), jnp.float32),
            grid_spec=pltpu.PrefetchScalarGridSpec(
                num_scalar_prefetch=0,
                grid=grid,
                in_specs=[
                    pl.BlockSpec((bt, obs_dim), lambda i: (i, 0)),
                    pl.BlockSpec((obs_dim, hid_p), const),
                    pl.BlockSpec((1, hid_p), const),
                    pl.BlockSpec((hid_p, hid_p), const),
                    pl.BlockSpec((1, hid_p), const),
                    pl.BlockSpec((hid_p, act_p), const),
                    pl.BlockSpec((1, act_p), const),
                ],
                out_specs=pl.BlockSpec((bt, act_dim), lambda i: (i, 0)),
            ),
            compiler_params=pltpu.CompilerParams(
                # Batch tiles are independent -> shard across v7x TensorCores.
                dimension_semantics=("parallel",),
            ),
        )(x_p, w1, b1, w2, b2, w3, b3)

        return out if Bp == B else out[:B]

    return jax.jit(forward)


def init_params(key, obs_dim, act_dim, hidden):
    """Deterministic PyTorch-Linear-style init (uniform +/- 1/sqrt(fan_in))."""
    ks = jax.random.split(key, 6)

    def lin(kw, kb, fan_in, fan_out):
        bound = 1.0 / jnp.sqrt(fan_in)
        w = jax.random.uniform(kw, (fan_in, fan_out), jnp.float32, -bound, bound)
        b = jax.random.uniform(kb, (1, fan_out), jnp.float32, -bound, bound)
        return w, b

    w1, b1 = lin(ks[0], ks[1], obs_dim, hidden)
    w2, b2 = lin(ks[2], ks[3], hidden, hidden)
    w3, b3 = lin(ks[4], ks[5], hidden, act_dim)
    return dict(w1=w1, b1=b1, w2=w2, b2=b2, w3=w3, b3=b3)


def cpdnet_reference(x, p):
    h1 = jnp.maximum(x @ p["w1"] + p["b1"], 0.0)
    h2 = jnp.maximum(h1 @ p["w2"] + p["b2"], 0.0)
    logits = h2 @ p["w3"] + p["b3"]
    return jax.nn.softmax(logits, axis=-1)


if __name__ == "__main__":
    obs_dim, act_dim, hidden = 32, 8, 64
    batch = 8  # small demo batch

    key = jax.random.PRNGKey(0)
    k_x, k_x2, k_p = jax.random.split(key, 3)
    x = jax.random.normal(k_x, (batch, obs_dim), dtype=jnp.float32)
    params = init_params(k_p, obs_dim, act_dim, hidden)

    # f32 matmul path: exactness check against the pure-JAX reference.
    fwd_f32 = make_cpdnet_forward(params, matmul_dtype=jnp.float32)
    out = jax.block_until_ready(fwd_f32(x))
    ref = cpdnet_reference(x, params)
    assert out.shape == (batch, act_dim)
    assert jnp.allclose(out, ref, atol=1e-4, rtol=1e-4)
    assert jnp.allclose(jnp.sum(out, axis=-1), 1.0, atol=1e-4)

    # Default bf16 matmul path + ragged batch (exercises the row-padding path).
    x2 = jax.random.normal(k_x2, (37, obs_dim), dtype=jnp.float32)
    fwd_bf16 = make_cpdnet_forward(params)  # bf16 matmuls by default
    out2 = jax.block_until_ready(fwd_bf16(x2))
    ref2 = cpdnet_reference(x2, params)
    assert out2.shape == (37, act_dim)
    assert jnp.allclose(out2, ref2, atol=3e-2)
    assert jnp.allclose(jnp.sum(out2, axis=-1), 1.0, atol=1e-4)

    print("KERNEL_OK")
</pallas_src>

<mosaic_0001>
module attributes {stable_mosaic.version = 11 : i64} {
  func.func @cpdnet_kernel(%arg0: i32, %arg1: memref<16x32xf32, #tpu.memory_space<vmem>>, %arg2: memref<32x128xf32, #tpu.memory_space<vmem>>, %arg3: memref<1x128xf32, #tpu.memory_space<vmem>>, %arg4: memref<128x128xf32, #tpu.memory_space<vmem>>, %arg5: memref<1x128xf32, #tpu.memory_space<vmem>>, %arg6: memref<128x128xf32, #tpu.memory_space<vmem>>, %arg7: memref<1x128xf32, #tpu.memory_space<vmem>>, %arg8: memref<16x8xf32, #tpu.memory_space<vmem>>) attributes {dimension_semantics = [#tpu.dimension_semantics<parallel>], iteration_bounds = array<i64: 1>, scalar_prefetch = 0 : i64, scratch_operands = 0 : i64, tpu.core_type = #tpu.core_type<tc>, window_params = [{transform_indices = @transform_0, window_bounds = array<i64: 16, 32>}, {pipeline_mode = #tpu.pipeline_mode<synchronous>, transform_indices = @transform_1, window_bounds = array<i64: 32, 128>}, {pipeline_mode = #tpu.pipeline_mode<synchronous>, transform_indices = @transform_2, window_bounds = array<i64: 1, 128>}, {pipeline_mode = #tpu.pipeline_mode<synchronous>, transform_indices = @transform_3, window_bounds = array<i64: 128, 128>}, {pipeline_mode = #tpu.pipeline_mode<synchronous>, transform_indices = @transform_4, window_bounds = array<i64: 1, 128>}, {pipeline_mode = #tpu.pipeline_mode<synchronous>, transform_indices = @transform_5, window_bounds = array<i64: 128, 128>}, {pipeline_mode = #tpu.pipeline_mode<synchronous>, transform_indices = @transform_6, window_bounds = array<i64: 1, 128>}, {transform_indices = @transform_7, window_bounds = array<i64: 16, 8>}]} {
    %c0 = arith.constant 0 : index
    %c0_0 = arith.constant 0 : index
    %0 = vector.load %arg1[%c0, %c0_0] : memref<16x32xf32, #tpu.memory_space<vmem>>, vector<16x32xf32>
    %c0_1 = arith.constant 0 : index
    %c0_2 = arith.constant 0 : index
    %1 = vector.load %arg2[%c0_1, %c0_2] : memref<32x128xf32, #tpu.memory_space<vmem>>, vector<32x128xf32>
    %cst = arith.constant dense<0.000000e+00> : vector<16x128xf32>
    %2 = tpu.matmul %0, %1, %cst {dimension_numbers = #tpu.dot_dimension_numbers<[1], [0], [0], [1], [0, 0, 1, 1], [], []>} : vector<16x32xf32>, vector<32x128xf32>, vector<16x128xf32> -> vector<16x128xf32>
    %c0_3 = arith.constant 0 : index
    %c0_4 = arith.constant 0 : index
    %3 = vector.load %arg3[%c0_3, %c0_4] : memref<1x128xf32, #tpu.memory_space<vmem>>, vector<1x128xf32>
    %4 = vector.broadcast %3 : vector<1x128xf32> to vector<16x128xf32>
    %5 = arith.addf %2, %4 : vector<16x128xf32>
    %cst_5 = arith.constant 0.000000e+00 : f32
    %6 = vector.broadcast %cst_5 : f32 to vector<16x128xf32>
    %7 = arith.maximumf %5, %6 : vector<16x128xf32>
    %c0_6 = arith.constant 0 : index
    %c0_7 = arith.constant 0 : index
    %8 = vector.load %arg4[%c0_6, %c0_7] : memref<128x128xf32, #tpu.memory_space<vmem>>, vector<128x128xf32>
    %cst_8 = arith.constant dense<0.000000e+00> : vector<16x128xf32>
    %9 = tpu.matmul %7, %8, %cst_8 {dimension_numbers = #tpu.dot_dimension_numbers<[1], [0], [0], [1], [0, 0, 1, 1], [], []>} : vector<16x128xf32>, vector<128x128xf32>, vector<16x128xf32> -> vector<16x128xf32>
    %c0_9 = arith.constant 0 : index
    %c0_10 = arith.constant 0 : index
    %10 = vector.load %arg5[%c0_9, %c0_10] : memref<1x128xf32, #tpu.memory_space<vmem>>, vector<1x128xf32>
    %11 = vector.broadcast %10 : vector<1x128xf32> to vector<16x128xf32>
    %12 = arith.addf %9, %11 : vector<16x128xf32>
    %cst_11 = arith.constant 0.000000e+00 : f32
    %13 = vector.broadcast %cst_11 : f32 to vector<16x128xf32>
    %14 = arith.maximumf %12, %13 : vector<16x128xf32>
    %c0_12 = arith.constant 0 : index
    %c0_13 = arith.constant 0 : index
    %15 = vector.load %arg6[%c0_12, %c0_13] : memref<128x128xf32, #tpu.memory_space<vmem>>, vector<128x128xf32>
    %cst_14 = arith.constant dense<0.000000e+00> : vector<16x128xf32>
    %16 = tpu.matmul %14, %15, %cst_14 {dimension_numbers = #tpu.dot_dimension_numbers<[1], [0], [0], [1], [0, 0, 1, 1], [], []>} : vector<16x128xf32>, vector<128x128xf32>, vector<16x128xf32> -> vector<16x128xf32>
    %c0_15 = arith.constant 0 : index
    %c0_16 = arith.constant 0 : index
    %17 = vector.load %arg7[%c0_15, %c0_16] : memref<1x128xf32, #tpu.memory_space<vmem>>, vector<1x128xf32>
    %18 = vector.broadcast %17 : vector<1x128xf32> to vector<16x128xf32>
    %19 = arith.addf %16, %18 : vector<16x128xf32>
    %cst_17 = arith.constant dense<0xFF800000> : vector<16xf32>
    %20 = vector.multi_reduction <maximumf>, %19, %cst_17 [1] : vector<16x128xf32> to vector<16xf32>
    %21 = vector.shape_cast %20 : vector<16xf32> to vector<16x1xf32>
    %22 = vector.broadcast %21 : vector<16x1xf32> to vector<16x128xf32>
    %23 = arith.subf %19, %22 : vector<16x128xf32>
    %24 = math.exp %23 : vector<16x128xf32>
    %cst_18 = arith.constant dense<0.000000e+00> : vector<16xf32>
    %25 = vector.multi_reduction <add>, %24, %cst_18 [1] : vector<16x128xf32> to vector<16xf32>
    %26 = vector.shape_cast %25 : vector<16xf32> to vector<16x1xf32>
    %27 = vector.broadcast %26 : vector<16x1xf32> to vector<16x128xf32>
    %28 = arith.divf %24, %27 : vector<16x128xf32>
    %29 = vector.extract_strided_slice %28 {offsets = [0, 0], sizes = [16, 8], strides = [1, 1]} : vector<16x128xf32> to vector<16x8xf32>
    %c0_19 = arith.constant 0 : index
    %c0_20 = arith.constant 0 : index
    %30 = vector.load %arg8[%c0_19, %c0_20] : memref<16x8xf32, #tpu.memory_space<vmem>>, vector<16x8xf32>
    tpu.vector_store %arg8[%c0_19, %c0_20], %29 {strides = array<i32>} : memref<16x8xf32, #tpu.memory_space<vmem>>, vector<16x8xf32>,
    return
  }
  func.func @transform_0(%arg0: i32) -> (i32, i32) {
    %c0_i32 = arith.constant 0 : i32
    %c0_i32_0 = arith.constant 0 : i32
    return %arg0, %c0_i32 : i32, i32
  }
  func.func @transform_1(%arg0: i32) -> (i32, i32) {
    %c0_i32 = arith.constant 0 : i32
    %c0_i32_0 = arith.constant 0 : i32
    %c0_i32_1 = arith.constant 0 : i32
    return %c0_i32, %c0_i32_0 : i32, i32
  }
  func.func @transform_2(%arg0: i32) -> (i32, i32) {
    %c0_i32 = arith.constant 0 : i32
    %c0_i32_0 = arith.constant 0 : i32
    %c0_i32_1 = arith.constant 0 : i32
    return %c0_i32, %c0_i32_0 : i32, i32
  }
  func.func @transform_3(%arg0: i32) -> (i32, i32) {
    %c0_i32 = arith.constant 0 : i32
    %c0_i32_0 = arith.constant 0 : i32
    %c0_i32_1 = arith.constant 0 : i32
    return %c0_i32, %c0_i32_0 : i32, i32
  }
  func.func @transform_4(%arg0: i32) -> (i32, i32) {
    %c0_i32 = arith.constant 0 : i32
    %c0_i32_0 = arith.constant 0 : i32
    %c0_i32_1 = arith.constant 0 : i32
    return %c0_i32, %c0_i32_0 : i32, i32
  }
  func.func @transform_5(%arg0: i32) -> (i32, i32) {
    %c0_i32 = arith.constant 0 : i32
    %c0_i32_0 = arith.constant 0 : i32
    %c0_i32_1 = arith.constant 0 : i32
    return %c0_i32, %c0_i32_0 : i32, i32
  }
  func.func @transform_6(%arg0: i32) -> (i32, i32) {
    %c0_i32 = arith.constant 0 : i32
    %c0_i32_0 = arith.constant 0 : i32
    %c0_i32_1 = arith.constant 0 : i32
    return %c0_i32, %c0_i32_0 : i32, i32
  }
  func.func @transform_7(%arg0: i32) -> (i32, i32) {
    %c0_i32 = arith.constant 0 : i32
    %c0_i32_0 = arith.constant 0 : i32
    return %arg0, %c0_i32 : i32, i32
  }
}

</mosaic_0001>

<bundles_post_ra>
// kernel: forward.1
= control target key start
LH: loop header
LB: loop body
LE: loop exit
PB: predicated region body
PF: predicated region fallthrough
CT: control target
= control target key end

     0   :  { %12 = vsyncpa [#allocation3], 0  ;;  %s792_s0 = inlined_call_operand.vmem [shape: f32[16,32], index: 0, kind: input, shape index: {}]   ;;  %s793_s1 = inlined_call_operand.hbm [shape: f32[32,128], index: 1, kind: input, shape index: {}]   ;;  %s794_s2 = inlined_call_operand.vmem [shape: f32[1,128], index: 2, kind: input, shape index: {}]   ;;  %s795_s3 = inlined_call_operand.hbm [shape: f32[128,128], index: 3, kind: input, shape index: {}]   ;;  %s796_s4 = inlined_call_operand.vmem [shape: f32[1,128], index: 4, kind: input, shape index: {}]   ;;  %s797_s5 = inlined_call_operand.hbm [shape: f32[128,128], index: 5, kind: input, shape index: {}]   ;;  %s798_s6 = inlined_call_operand.vmem [shape: f32[1,128], index: 6, kind: input, shape index: {}]   ;;  %s799_s7 = inlined_call_operand.vmem [shape: f32[16,8], index: 7, kind: output, shape index: {}]  }
   0x1   :  { %13 = vsyncpa [#allocation5], 0  ;;  %s672_s24 = smov [#allocation4]   ;;  %s673_s26 = smov [#allocation2]  }
   0x2   :  { %s35_s25 = sshll.u32 %s672_s24, 4  ;;  %s21_s27 = sshll.u32 %s673_s26, 4  ;;  %s36_s25 = int_to_ptr.vmem [resolvable:$true] %s35_s25  ;;  %s717_s27 = int_to_ptr.vmem [resolvable:$true] %s21_s27 }
   0x3   :  { %s602_s30 = scalar_lea.hbm %s795_s3, 2048 }
   0x4   :  { %p603_p0 = scmp.ne.s32.totalorder %s795_s3, %s602_s30  ;;  %p606_p1 = scmp.lt.u32.totalorder %s602_s30, %s795_s3 }
   0x6   :  { %p608_p2 = pnand %p606_p1, %p603_p0 }
   0x8   :  { %611 = shalt.err (!%p608_p2)
}
   0x9   :  { %s612_s12 = scalar_lea.vmem %s36_s25, 2048  ;;  %p617_p4 = scmp.lt.s32.totalorder %s36_s25, %s36_s25 }
   0xa   :  { %p613_p3 = scmp.ne.s32.totalorder %s36_s25, %s612_s12  ;;  %p618_p5 = scmp.lt.s32.totalorder %s612_s12, %s612_s12 }
   0xc   :  { %p619_p6 = por %p618_p5, %p617_p4 }
   0xe   :  { %p620_p7 = pnand %p619_p6, %p613_p3 }
  0x10   :  { %623 = shalt.err (!%p620_p7)
}
  0x11   :  { %s674_s13 = smov 128   ;;  %s675_s14 = smov 8  }
  0x12   :  { %41 = dma.hbm_to_vmem [thread:$0]  %s795_s3, 2048, %s36_s25, [#allocation5], %s674_s13, %s674_s13, %s675_s14  }
  0x13   :  { %s624_s19 = scalar_lea.hbm %s793_s1, 512 }
  0x14   :  { %p625_p8 = scmp.ne.s32.totalorder %s793_s1, %s624_s19  ;;  %p628_p9 = scmp.lt.u32.totalorder %s624_s19, %s793_s1 }
  0x16   :  { %p630_p10 = pnand %p628_p9, %p625_p8 }
  0x18   :  { %633 = shalt.err (!%p630_p10)
}
  0x19   :  { %s634_s24 = scalar_lea.vmem %s717_s27, 512  ;;  %p639_p12 = scmp.lt.s32.totalorder %s717_s27, %s717_s27 }
  0x1a   :  { %p635_p11 = scmp.ne.s32.totalorder %s717_s27, %s634_s24  ;;  %p640_p13 = scmp.lt.s32.totalorder %s634_s24, %s634_s24 }
  0x1c   :  { %p641_p0 = por %p640_p13, %p639_p12 }
  0x1e   :  { %p642_p1 = pnand %p641_p0, %p635_p11 }
  0x20   :  { %645 = shalt.err (!%p642_p1)
}
  0x21   :  { %27 = dma.hbm_to_vmem [thread:$0]  %s793_s1, 512, %s717_s27, [#allocation3], %s674_s13, %s674_s13, %s675_s14  }
  0x22   :  { %s676_s26 = smov [#allocation6]   ;;  %s646_s8 = scalar_lea.hbm %s797_s5, 2048 }
  0x23   :  { %s49_s28 = sshll.u32 %s676_s26, 4  ;;  %p647_p2 = scmp.ne.s32.totalorder %s797_s5, %s646_s8  ;;  %s50_s28 = int_to_ptr.vmem [resolvable:$true] %s49_s28 }
  0x24   :  { %p650_p3 = scmp.lt.u32.totalorder %s646_s8, %s797_s5 }
  0x26   :  { %p652_p4 = pnand %p650_p3, %p647_p2 }
  0x28   :  { %655 = shalt.err (!%p652_p4)
}
  0x29   :  { %s656_s15 = scalar_lea.vmem %s50_s28, 2048  ;;  %p661_p6 = scmp.lt.s32.totalorder %s50_s28, %s50_s28 }
  0x2a   :  { %p657_p5 = scmp.ne.s32.totalorder %s50_s28, %s656_s15  ;;  %p662_p7 = scmp.lt.s32.totalorder %s656_s15, %s656_s15 }
  0x2c   :  { %p663_p8 = por %p662_p7, %p661_p6 }
  0x2e   :  { %p664_p9 = pnand %p663_p8, %p657_p5 }
  0x30   :  { %667 = shalt.err (!%p664_p9)
}
  0x31   :  { %55 = dma.hbm_to_vmem [thread:$0]  %s797_s5, 2048, %s50_s28, [#allocation5], %s674_s13, %s674_s13, %s675_s14  }
  0x32   :  { %668 = dma.done.wait [#allocation3], 512  }
  0x33   :  { %669 = vsyncadd [#allocation3], 4294966784 }
  0x34   :  { %670 = dma.done.wait [#allocation5], 4096  }
  0x35   :  { %671 = vsyncadd [#allocation5], 4294963200  ;;  %vm80_vm0 = vcmask 261120   ;;  %v69_v0 = vld [vmem:[#allocation2] sm:$0xff]  ;;  %v70_v1 = vld [vmem:[#allocation2 + $0x8] sm:$0xff]  ;;  %vm380_vm1 = vcmask 64512  }
  0x36   :  { %v71_v2 = vld [vmem:[#allocation2 + $0x10] sm:$0xff]  ;;  %v517_v3 = vpack.c.bf16 %v70_v1, %v69_v0  ;;  %v72_v4 = vld [vmem:[#allocation2 + $0x18] sm:$0xff]  ;;  %v67_v5 = vld [vmem:[%s792_s0] sm:$0xff] }
  0x37   :  { %v521_v6 = vpack.c.bf16 %v72_v4, %v71_v2  ;;  %444 = vmatprep.mubr.msk.f32.mxu0 %vm80_vm0, %v67_v5  ;;  %v164_v7 = vld [vmem:[#allocation4] sm:$0xff]  ;;  %v165_v8 = vld [vmem:[#allocation4 + $0x8] sm:$0xff]  ;;  %v166_v9 = vld [vmem:[#allocation4 + $0x10] sm:$0xff] }
  0x38   :  { %518 = vmatprep.subr.bf16.mxu0 %v517_v3  ;;  %v525_v10 = vpack.c.bf16 %v165_v8, %v164_v7  ;;  %v167_v11 = vld [vmem:[#allocation4 + $0x18] sm:$0xff]  ;;  %v168_v13 = vld [vmem:[#allocation4 + $0x20] sm:$0xff]  ;;  %v169_v14 = vld [vmem:[#allocation4 + $0x28] sm:$0xff] }
  0x39   :  { %520 = vmatpush3.bf16.msra.mxu0 %v517_v3  ;;  %v529_v12 = vpack.c.bf16 %v167_v11, %v166_v9  ;;  %v533_v15 = vpack.c.bf16 %v169_v14, %v168_v13  ;;  %v68_v16 = vld [vmem:[%s792_s0 + $0x8] sm:$0xff]  ;;  %v170_v17 = vld [vmem:[#allocation4 + $0x30] sm:$0xff]  ;;  %v171_v18 = vld [vmem:[#allocation4 + $0x38] sm:$0xff] }
  0x3a   :  { %522 = vmatprep.subr.bf16.mxu0 %v521_v6  ;;  %526 = vmatprep.subr.bf16.mxu1 %v525_v10  ;;  %v537_v19 = vpack.c.bf16 %v171_v18, %v170_v17  ;;  %v172_v20 = vld [vmem:[#allocation4 + $0x40] sm:$0xff]  ;;  %v173_v21 = vld [vmem:[#allocation4 + $0x48] sm:$0xff]  ;;  %v174_v23 = vld [vmem:[#allocation4 + $0x50] sm:$0xff] }
  0x3b   :  { %528 = vmatpush3.bf16.msra.mxu1 %v525_v10  ;;  %v541_v22 = vpack.c.bf16 %v173_v21, %v172_v20  ;;  %v175_v24 = vld [vmem:[#allocation4 + $0x58] sm:$0xff]  ;;  %v176_v26 = vld [vmem:[#allocation4 + $0x60] sm:$0xff]  ;;  %v177_v27 = vld [vmem:[#allocation4 + $0x68] sm:$0xff] }
  0x3c   :  { %530 = vmatprep.subr.bf16.mxu1 %v529_v12  ;;  %v545_v25 = vpack.c.bf16 %v175_v24, %v174_v23  ;;  %v549_v28 = vpack.c.bf16 %v177_v27, %v176_v26  ;;  %v178_v29 = vld [vmem:[#allocation4 + $0x70] sm:$0xff]  ;;  %v179_v30 = vld [vmem:[#allocation4 + $0x78] sm:$0xff]  ;;  %v264_v32 = vld [vmem:[#allocation6] sm:$0xff] }
  0x3d   :  { %524 = vmatpush3.bf16.msra.mxu0 %v521_v6  ;;  %v553_v31 = vpack.c.bf16 %v179_v30, %v178_v29  ;;  %v265_v33 = vld [vmem:[#allocation6 + $0x8] sm:$0xff]  ;;  %v266_v34 = vld [vmem:[#allocation6 + $0x10] sm:$0xff]  ;;  %v267_v36 = vld [vmem:[#allocation6 + $0x18] sm:$0xff] }
  0x3e   :  { %v557_v35 = vpack.c.bf16 %v265_v33, %v264_v32  ;;  %v561_v37 = vpack.c.bf16 %v267_v36, %v266_v34  ;;  %v268_v38 = vld [vmem:[#allocation6 + $0x20] sm:$0xff]  ;;  %v269_v39 = vld [vmem:[#allocation6 + $0x28] sm:$0xff]  ;;  %v270_v41 = vld [vmem:[#allocation6 + $0x30] sm:$0xff] }
  0x3f   :  { %532 = vmatpush3.bf16.msra.mxu1 %v529_v12  ;;  %v565_v40 = vpack.c.bf16 %v269_v39, %v268_v38  ;;  %v271_v42 = vld [vmem:[#allocation6 + $0x38] sm:$0xff]  ;;  %v272_v44 = vld [vmem:[#allocation6 + $0x40] sm:$0xff]  ;;  %v273_v45 = vld [vmem:[#allocation6 + $0x48] sm:$0xff] }
  0x40   :  { %445 = vmatmul.mubr.msk.f32.vlgmr.msra.gmra.mrb[0].mxu0 %vm80_vm0, %v68_v16  ;;  %534 = vmatprep.subr.bf16.mxu1 %v533_v15  ;;  %v569_v43 = vpack.c.bf16 %v271_v42, %v270_v41  ;;  %v573_v46 = vpack.c.bf16 %v273_v45, %v272_v44  ;;  %v274_v47 = vld [vmem:[#allocation6 + $0x50] sm:$0xff]  ;;  %v275_v48 = vld [vmem:[#allocation6 + $0x58] sm:$0xff]  ;;  %v276_v50 = vld [vmem:[#allocation6 + $0x60] sm:$0xff] }
  0x41   :  { %558 = vmatprep.subr.bf16.mxu0 %v557_v35  ;;  %v577_v49 = vpack.c.bf16 %v275_v48, %v274_v47  ;;  %v277_v51 = vld [vmem:[#allocation6 + $0x68] sm:$0xff]  ;;  %v389_v53 = vld [vmem:[%s794_s2] ss:$0 sm:$0xff]  ;;  %v278_v60 = vld [vmem:[#allocation6 + $0x70] sm:$0xff] }
  0x42   :  { %560 = vmatpush3.bf16.msra.mxu0 %v557_v35  ;;  %v581_v52 = vpack.c.bf16 %v277_v51, %v276_v50  ;;  %v279_v61 = vld [vmem:[#allocation6 + $0x78] sm:$0xff]  ;;  %v392_v63 = vld [vmem:[%s796_s4] ss:$0 sm:$0xff] }
  0x43   :  { %536 = vmatpush3.bf16.msra.mxu1 %v533_v15  ;;  %562 = vmatprep.subr.bf16.mxu0 %v561_v37  ;;  %v585_v62 = vpack.c.bf16 %v279_v61, %v278_v60  ;;  %v393_v6 = vld [vmem:[%s798_s6] ss:$0 sm:$0xff] }
  0x44   :  { %538 = vmatprep.subr.bf16.mxu1 %v537_v19 }
  0x46   :  { %564 = vmatpush3.bf16.msra.mxu0 %v561_v37 }
  0x47   :  { %540 = vmatpush3.bf16.msra.mxu1 %v537_v19  ;;  %566 = vmatprep.subr.bf16.mxu0 %v565_v40 }
  0x48   :  { %542 = vmatprep.subr.bf16.mxu1 %v541_v22 }
  0x4a   :  { %568 = vmatpush3.bf16.msra.mxu0 %v565_v40 }
  0x4b   :  { %544 = vmatpush3.bf16.msra.mxu1 %v541_v22  ;;  %570 = vmatprep.subr.bf16.mxu0 %v569_v43 }
  0x4c   :  { %546 = vmatprep.subr.bf16.mxu1 %v545_v25 }
  0x4e   :  { %572 = vmatpush3.bf16.msra.mxu0 %v569_v43 }
  0x4f   :  { %548 = vmatpush3.bf16.msra.mxu1 %v545_v25  ;;  %574 = vmatprep.subr.bf16.mxu0 %v573_v46 }
  0x50   :  { %550 = vmatprep.subr.bf16.mxu1 %v549_v28 }
  0x52   :  { %576 = vmatpush3.bf16.msra.mxu0 %v573_v46 }
  0x53   :  { %552 = vmatpush3.bf16.msra.mxu1 %v549_v28  ;;  %578 = vmatprep.subr.bf16.mxu0 %v577_v49 }
  0x54   :  { %554 = vmatprep.subr.bf16.mxu1 %v553_v31 }
  0x56   :  { %580 = vmatpush3.bf16.msra.mxu0 %v577_v49 }
  0x57   :  { %556 = vmatpush3.bf16.msra.mxu1 %v553_v31  ;;  %582 = vmatprep.subr.bf16.mxu0 %v581_v52 }
  0x5a   :  { %584 = vmatpush3.bf16.msra.mxu0 %v581_v52 }
  0x5b   :  { %586 = vmatprep.subr.bf16.mxu0 %v585_v62 }
  0x5e   :  { %588 = vmatpush3.bf16.msra.mxu0 %v585_v62 }
 0x113   :  { %v446_v54 = vpop.f32.mrb[0].mxu0 }
 0x114   :  { %v159_v55 = vadd.f32 %v446_v54, %v389_v53  ;;  %v153_v56 = vpop.f32.mrb[1].mxu0 }
 0x115   :  { %v154_v57 = vadd.f32 %v389_v53, %v153_v56 }
 0x116   :  { %v163_v59 = vmax.f32 %v159_v55, 0.0 }
 0x117   :  { %v162_v58 = vmax.f32 %v154_v57, 0.0 }
 0x119   :  { %479 = vmatprep.mubr.f32.mxu1 %v162_v58 }
 0x11a   :  { %480 = vmatmul.mubr.f32.vlgmr.msra.gmra.mrb[0].mxu1 %v163_v59 }
 0x1ed   :  { %v481_v0 = vpop.f32.mrb[0].mxu1 }
 0x1ee   :  { %v259_v1 = vadd.f32 %v481_v0, %v392_v63  ;;  %v253_v2 = vpop.f32.mrb[1].mxu1 }
 0x1ef   :  { %v254_v3 = vadd.f32 %v392_v63, %v253_v2 }
 0x1f0   :  { %v263_v5 = vmax.f32 %v259_v1, 0.0 }
 0x1f1   :  { %v262_v4 = vmax.f32 %v254_v3, 0.0 }
 0x1f3   :  { %514 = vmatprep.mubr.f32.mxu0 %v262_v4 }
 0x1f4   :  { %515 = vmatmul.mubr.f32.vlgmr.msra.gmra.mrb[2].mxu0 %v263_v5 }
 0x2c7   :  { %v516_v7 = vpop.f32.mrb[2].mxu0 }
 0x2c8   :  { %v353_v8 = vpop.f32.mrb[3].mxu0  ;;  %v359_v10 = vadd.f32 %v516_v7, %v393_v6 }
 0x2c9   :  { %v354_v9 = vadd.f32 %v393_v6, %v353_v8 }
 0x2cb   :  { %362 = vmax.xlane.f32.xlu0 %v354_v9 }
 0x2cf   :  { %364 = vmax.xlane.f32.xlu0 %v359_v10 }
 0x358   :  { %v363_v11 = vpop.xlane.xlu0 %362 }
 0x359   :  { %v366_v12 = vsub.f32 %v354_v9, %v363_v11 }
 0x35b   :  { %v368_v13 = vmul.f32 1.442695, %v366_v12 }
 0x35c   :  { %v365_v14 = vpop.xlane.xlu0 %364 }
 0x35d   :  { %594 = vpow2.f32 %v368_v13  ;;  %v367_v15 = vsub.f32 %v359_v10, %v365_v14 }
 0x35f   :  { %v370_v16 = vmul.f32 1.442695, %v367_v15 }
 0x361   :  { %596 = vpow2.f32 %v370_v16 }
 0x367   :  { %v595_v17 = vpop.eup %594 }
 0x368   :  { %372 = vadd.xlane.f32.xlu1 %v595_v17 }
 0x36b   :  { %v597_v18 = vpop.eup %596 }
 0x36c   :  { %374 = vadd.xlane.f32.xlu1 %v597_v18 }
 0x3f5   :  { %v373_v19 = vpop.xlane.xlu1 %372 }
 0x3f6   :  { %598 = vrcp.f32 %v373_v19 }
 0x3f9   :  { %v375_v20 = vpop.xlane.xlu1 %374 }
 0x3fa   :  { %600 = vrcp.f32 %v375_v20 }
 0x400   :  { %v599_v21 = vpop.eup %598 }
 0x401   :  { %v377_v22 = vmul.f32 %v599_v21, %v595_v17 }
 0x403   :  { %381 = vst.msk [vmem:[%s799_s7] sm:$0xff] %vm380_vm1, %v377_v22 }
 0x404   :  { %v601_v23 = vpop.eup %600 }
 0x405   :  { %v379_v24 = vmul.f32 %v601_v23, %v597_v18 }
 0x407   :  { %382 = vst.msk [vmem:[%s799_s7 + $0x8] sm:$0xff] %vm380_vm1, %v379_v24 }
 0x408   :  { %387 = vsyncpa [#allocation3], 1 }
 0x409   :  { %388 = vsyncpa [#allocation5], 1 }

</bundles_post_ra>
